<compile_context>
chip_gen: v5e
topology: v5e:2x2
jax: 0.10.0
libtpu: 0.0.40
codegen_flags: <defaults>
</compile_context>

<pallas_src>
import jax
import jax.numpy as jnp
from jax.experimental import pallas as pl
from jax.experimental.pallas import tpu as pltpu


def _round_up(x: int, m: int) -> int:
    return ((x + m - 1) // m) * m


def _linear_kernel(x_ref, wt_ref, b_ref, o_ref):
    # x_ref : (TM, K)    tile of the input rows
    # wt_ref: (K, N)     pre-transposed weight, VMEM-resident across all tiles
    # b_ref : (1, N)     bias, VMEM-resident
    # o_ref : (TM, N)    true-width output tile (masked writeback on ragged tile)
    acc = jnp.dot(x_ref[...], wt_ref[...], preferred_element_type=jnp.float32)
    o_ref[...] = (acc + b_ref[...]).astype(o_ref.dtype)


def prepare_params(weight, bias):
    """One-time parameter prep (do this at init, not per forward call).

    weight: (dim, input_dim)  PyTorch nn.Linear layout
    bias:   (dim,)
    returns wt (input_dim, dim), b2d (1, dim)
    """
    wt = jnp.asarray(weight).T                       # (input_dim, dim)
    b2d = jnp.asarray(bias).reshape(1, -1)           # (1, dim)
    return wt, b2d


def _choose_tm(batch: int, block_m: int) -> int:
    """Pick the batch tile size.

    - Whole batch in one tile when it fits (full-dim block is always legal).
    - Otherwise a multiple of 8, shrunk slightly so the tile count is even
      (v7x has 2 TensorCores sharing the grid; an odd count splits 2:1 and
      the slow core sets wall time).
    """
    if batch <= block_m:
        return batch
    block_m = _round_up(block_m, 8)
    n_tiles = -(-batch // block_m)          # ceil div
    if n_tiles % 2 == 1:
        n_tiles += 1
    return _round_up(-(-batch // n_tiles), 8)


def single_attribute_branch(x, wt, b2d, *, block_m: int = 2048):
    """Pallas equivalent of SingleAttributeBranch.forward: y = x @ W^T + b.

    x:   (batch, input_dim) float32
    wt:  (input_dim, dim)   float32   (from prepare_params)
    b2d: (1, dim)           float32   (from prepare_params)
    returns (batch, dim)    float32
    """
    batch, input_dim = x.shape
    dim = wt.shape[1]

    tm = _choose_tm(batch, block_m)
    grid = (pl.cdiv(batch, tm),)

    itemsize = jnp.dtype(x.dtype).itemsize
    cost = pl.CostEstimate(
        flops=2 * batch * input_dim * dim,
        transcendentals=0,
        bytes_accessed=(batch * input_dim + input_dim * dim + dim
                        + batch * dim) * itemsize,
    )

    return pl.pallas_call(
        _linear_kernel,
        out_shape=jax.ShapeDtypeStruct((batch, dim), x.dtype),
        grid=grid,
        in_specs=[
            pl.BlockSpec((tm, input_dim), lambda i: (i, 0)),   # x: tiled over batch
            pl.BlockSpec((input_dim, dim), lambda i: (0, 0)),  # weight: resident
            pl.BlockSpec((1, dim), lambda i: (0, 0)),          # bias: resident
        ],
        out_specs=pl.BlockSpec((tm, dim), lambda i: (i, 0)),   # 1:1 with x tile
        compiler_params=pltpu.CompilerParams(
            dimension_semantics=("parallel",),   # shard batch tiles across TCs
        ),
        cost_estimate=cost,
    )(x, wt, b2d)


if __name__ == "__main__":
    key = jax.random.PRNGKey(0)
    kx, kw, kb, kx2 = jax.random.split(key, 4)

    # Small shapes consistent with the module: batch=8, input_dim=32, dim=16.
    batch, input_dim, dim = 8, 32, 16

    # Deterministic parameter init (mimics PyTorch Linear's uniform bound).
    bound = 1.0 / jnp.sqrt(jnp.float32(input_dim))
    weight = jax.random.uniform(kw, (dim, input_dim), jnp.float32, -bound, bound)
    bias = jax.random.uniform(kb, (dim,), jnp.float32, -bound, bound)

    # One-time parameter prep (transpose only — no padding), outside hot path.
    wt, b2d = prepare_params(weight, bias)

    # --- check 1: tiny batch (single full-batch tile) ---
    x = jax.random.normal(kx, (batch, input_dim), jnp.float32)
    y = jax.block_until_ready(single_attribute_branch(x, wt, b2d))
    y_ref = x @ weight.T + bias
    assert y.shape == (batch, dim)
    assert jnp.allclose(y, y_ref, atol=1e-4, rtol=1e-4)

    # --- check 2: multi-tile grid, even tile count, ragged last block ---
    batch2 = 1040
    x2 = jax.random.normal(kx2, (batch2, input_dim), jnp.float32)
    y2 = jax.block_until_ready(single_attribute_branch(x2, wt, b2d, block_m=256))
    y2_ref = x2 @ weight.T + bias
    assert y2.shape == (batch2, dim)
    assert jnp.allclose(y2, y2_ref, atol=1e-4, rtol=1e-4)

    print("KERNEL_OK")
</pallas_src>

<mosaic_0001>
module attributes {stable_mosaic.version = 11 : i64} {
  func.func @_linear_kernel(%arg0: i32, %arg1: memref<8x32xf32, #tpu.memory_space<vmem>>, %arg2: memref<32x16xf32, #tpu.memory_space<vmem>>, %arg3: memref<1x16xf32, #tpu.memory_space<vmem>>, %arg4: memref<8x16xf32, #tpu.memory_space<vmem>>) attributes {dimension_semantics = [#tpu.dimension_semantics<parallel>], iteration_bounds = array<i64: 1>, scalar_prefetch = 0 : i64, scratch_operands = 0 : i64, tpu.core_type = #tpu.core_type<tc>, window_params = [{transform_indices = @transform_0, window_bounds = array<i64: 8, 32>}, {pipeline_mode = #tpu.pipeline_mode<synchronous>, transform_indices = @transform_1, window_bounds = array<i64: 32, 16>}, {pipeline_mode = #tpu.pipeline_mode<synchronous>, transform_indices = @transform_2, window_bounds = array<i64: 1, 16>}, {transform_indices = @transform_3, window_bounds = array<i64: 8, 16>}]} {
    %c0 = arith.constant 0 : index
    %c0_0 = arith.constant 0 : index
    %0 = vector.load %arg1[%c0, %c0_0] : memref<8x32xf32, #tpu.memory_space<vmem>>, vector<8x32xf32>
    %c0_1 = arith.constant 0 : index
    %c0_2 = arith.constant 0 : index
    %1 = vector.load %arg2[%c0_1, %c0_2] : memref<32x16xf32, #tpu.memory_space<vmem>>, vector<32x16xf32>
    %cst = arith.constant dense<0.000000e+00> : vector<8x16xf32>
    %2 = tpu.matmul %0, %1, %cst {dimension_numbers = #tpu.dot_dimension_numbers<[1], [0], [0], [1], [0, 0, 1, 1], [], []>} : vector<8x32xf32>, vector<32x16xf32>, vector<8x16xf32> -> vector<8x16xf32>
    %c0_3 = arith.constant 0 : index
    %c0_4 = arith.constant 0 : index
    %3 = vector.load %arg3[%c0_3, %c0_4] : memref<1x16xf32, #tpu.memory_space<vmem>>, vector<1x16xf32>
    %4 = vector.broadcast %3 : vector<1x16xf32> to vector<8x16xf32>
    %5 = arith.addf %2, %4 : vector<8x16xf32>
    %c0_5 = arith.constant 0 : index
    %c0_6 = arith.constant 0 : index
    %6 = vector.load %arg4[%c0_5, %c0_6] : memref<8x16xf32, #tpu.memory_space<vmem>>, vector<8x16xf32>
    tpu.vector_store %arg4[%c0_5, %c0_6], %5 {strides = array<i32>} : memref<8x16xf32, #tpu.memory_space<vmem>>, vector<8x16xf32>,
    return
  }
  func.func @transform_0(%arg0: i32) -> (i32, i32) {
    %c0_i32 = arith.constant 0 : i32
    %c0_i32_0 = arith.constant 0 : i32
    return %arg0, %c0_i32 : i32, i32
  }
  func.func @transform_1(%arg0: i32) -> (i32, i32) {
    %c0_i32 = arith.constant 0 : i32
    %c0_i32_0 = arith.constant 0 : i32
    %c0_i32_1 = arith.constant 0 : i32
    return %c0_i32, %c0_i32_0 : i32, i32
  }
  func.func @transform_2(%arg0: i32) -> (i32, i32) {
    %c0_i32 = arith.constant 0 : i32
    %c0_i32_0 = arith.constant 0 : i32
    %c0_i32_1 = arith.constant 0 : i32
    return %c0_i32, %c0_i32_0 : i32, i32
  }
  func.func @transform_3(%arg0: i32) -> (i32, i32) {
    %c0_i32 = arith.constant 0 : i32
    %c0_i32_0 = arith.constant 0 : i32
    return %arg0, %c0_i32 : i32, i32
  }
}

</mosaic_0001>

<bundles_post_ra>
// kernel: tpu_custom_call.1
= control target key start
LH: loop header
LB: loop body
LE: loop exit
PB: predicated region body
PF: predicated region fallthrough
CT: control target
= control target key end

     0   :  { %s137_s0 = inlined_call_operand.vmem [shape: f32[8,32], index: 0, kind: input, shape index: {}]   ;;  %s138_s1 = inlined_call_operand.vmem [shape: f32[32,16], index: 1, kind: input, shape index: {}]   ;;  %s139_s2 = inlined_call_operand.vmem [shape: f32[1,16], index: 2, kind: input, shape index: {}]   ;;  %s140_s3 = inlined_call_operand.hbm [shape: f32[8,16], index: 3, kind: output, shape index: {}]  }
   0x1   :  { %v19_v0 = vld [vmem:[%s138_s1 + $0x18] sm:$0xff]  ;;  %v18_v1 = vld [vmem:[%s138_s1 + $0x10] sm:$0xff]  ;;  %v17_v2 = vld [vmem:[%s138_s1 + $0x8] sm:$0xff] }
   0x2   :  { %40 = vmatpush.msra.mxu0 %v19_v0 }
   0x3   :  { %8 = vsyncpa [#allocation3], 0  ;;  %v16_v3 = vld [vmem:[%s138_s1] sm:$0xff]  ;;  %vm24_vm0 = vcmask 261120   ;;  %s95_s24 = smov [#allocation2]   ;;  %s57_s28 = sshll.u32 %s140_s3, 4  ;;  %s58_s28 = int_to_ptr.hbm [resolvable:$true] %s57_s28 }
   0x4   :  { %41 = vmatpush.msra.mxu0 %v18_v1  ;;  %v15_v4 = vld [vmem:[%s137_s0] sm:$0xff]  ;;  %s55_s25 = sshll.u32 %s95_s24, 4  ;;  %vm48_vm1 = vcmask 130048   ;;  %s56_s25 = int_to_ptr.vmem [resolvable:$true] %s55_s25 }
   0x5   :  { %v68_v5 = vld [vmem:[%s139_s2] ss:$0 sm:$0xff] }
   0x6   :  { %42 = vmatpush.msra.mxu0 %v17_v2 }
   0x8   :  { %43 = vmatpush.msra.mxu0 %v16_v3 }
   0x9   :  { %66 = vmatmul.msk.f32.vlgmr.msra.gmra.mxu0 %vm24_vm0, %v15_v4 }
  0x86   :  { %v45_v6 = vpop.f32.mrf.mxu0 }
  0x87   :  { %v46_v7 = vadd.f32 %v68_v5, %v45_v6 }
  0x89   :  { %49 = vst.msk [vmem:[#allocation2] sm:$0xff] %vm48_vm1, %v46_v7 }
  0x8a   :  { %60 = dma.vmem_to_hbm [thread:$0]  %s56_s25, 128, %s58_s28, [#allocation3]  }
  0x8b   :  { %93 = dma.done.wait [#allocation3], 128  }
  0x8c   :  { %94 = vsyncadd [#allocation3], 4294967168 }
  0x8d   :  { %65 = vsyncpa [#allocation3], 1 }

</bundles_post_ra>
